<compile_context>
chip_gen: v6e
topology: v6e:2x2x1
jax: 0.10.0
libtpu: 0.0.40
codegen_flags: <defaults>
</compile_context>

<pallas_src>
import jax
import jax.numpy as jnp
from jax.experimental import pallas as pl
from jax.experimental.pallas import tpu as pltpu


def graphsci_kernel(
    feat_ref, treat_ref,
    wphi_ref, bphi_ref,
    wg1_ref, bg1_ref,
    wg2_ref, bg2_ref,
    wyh_ref, wyg_ref, by_ref,
    y_ref, rep_ref,
):
    # phi_x = Linear(features): cast f32 rows to bf16 at the MXU boundary,
    # accumulate in f32.
    feat_bf = feat_ref[...].astype(jnp.bfloat16)
    phi_x = jnp.dot(feat_bf, wphi_ref[...],
                    preferred_element_type=jnp.float32) + bphi_ref[...]

    # rep = phi_x (stored in rep_ref's dtype, bf16 by default).
    rep_ref[...] = phi_x.astype(rep_ref.dtype)
    phi_x_bf = phi_x.astype(jnp.bfloat16)

    # phi_x_t = treatments.view(-1,1) * phi_x  -- elementwise kept in f32
    # (v5e has no bf16 VALU); cast to bf16 only for the MXU.
    phi_x_t = (treat_ref[...] * phi_x).astype(jnp.bfloat16)

    # rep_gnn = gnn(phi_x_t); relu; gnn_more[0]; relu   (dropout p=0 -> id)
    g = jnp.dot(phi_x_t, wg1_ref[...],
                preferred_element_type=jnp.float32) + bg1_ref[...]
    g = jnp.maximum(g, 0.0).astype(jnp.bfloat16)
    g = jnp.dot(g, wg2_ref[...],
                preferred_element_type=jnp.float32) + bg2_ref[...]
    g = jnp.maximum(g, 0.0).astype(jnp.bfloat16)

    # Fused output heads: column 0 = y0_pred, column 1 = y1_pred.
    #   wyh = [0 | W11[:h]]  (zeros-block of the skip-concat contributes 0)
    #   wyg = [W01[h:] | W11[h:]],  by = [b01 | b11]
    y_ref[...] = (jnp.dot(phi_x_bf, wyh_ref[...],
                          preferred_element_type=jnp.float32)
                  + jnp.dot(g, wyg_ref[...],
                            preferred_element_type=jnp.float32)
                  + by_ref[...])


def graphsci_forward(features, treatments, params, *, tile_n=8192,
                     rep_dtype=jnp.bfloat16):
    N, x_dim = features.shape
    h_dim = params["Wphi"].shape[1]
    g_dim = params["Wg1"].shape[1]

    # ---- Fuse the two skip-concat heads into one (., 2) projection ----
    W01, b01 = params["W01"], params["b01"]
    W11, b11 = params["W11"], params["b11"]
    wyh = jnp.concatenate(
        [jnp.zeros((h_dim, 1), jnp.float32), W11[:h_dim]], axis=1)   # (h, 2)
    wyg = jnp.concatenate([W01[h_dim:], W11[h_dim:]], axis=1)        # (g, 2)
    by = jnp.concatenate([b01, b11], axis=1)                         # (1, 2)

    # ---- Row tiling ----
    def _round_up(v, m):
        return ((int(v) + m - 1) // m) * m

    # 16-aligned (bf16 sublane packing; satisfies the (8,128) rule), capped
    # at 8192 (VMEM budget), and capped to ~ceil(N/4) so the row grid keeps
    # >= ~4 steps for v7x megacore sharding.
    tile_n = max(16, (int(tile_n) // 16) * 16)
    tile_n = min(tile_n, 8192)
    tile_n = min(tile_n, max(16, _round_up(pl.cdiv(N, 4), 16)))
    n_tiles = int(pl.cdiv(N, tile_n))

    # No padding / no wrapper-side casts of the big row arrays: Pallas masks
    # the ragged last row tile, and the bf16 cast happens inside the kernel.
    feat = features.astype(jnp.float32)
    treat2d = treatments.reshape(N, 1).astype(jnp.float32)

    def row_spec(d):
        return pl.BlockSpec((tile_n, d), lambda i: (i, 0))

    def full_spec(r, c):
        return pl.BlockSpec((r, c), lambda i: (0, 0))

    inputs = (
        feat, treat2d,
        params["Wphi"].astype(jnp.bfloat16), params["bphi"].astype(jnp.float32),
        params["Wg1"].astype(jnp.bfloat16), params["bg1"].astype(jnp.float32),
        params["Wg2"].astype(jnp.bfloat16), params["bg2"].astype(jnp.float32),
        wyh.astype(jnp.bfloat16), wyg.astype(jnp.bfloat16),
        by.astype(jnp.float32),
    )
    in_specs = [
        row_spec(x_dim), row_spec(1),
        full_spec(x_dim, h_dim), full_spec(1, h_dim),
        full_spec(h_dim, g_dim), full_spec(1, g_dim),
        full_spec(g_dim, g_dim), full_spec(1, g_dim),
        full_spec(h_dim, 2), full_spec(g_dim, 2), full_spec(1, 2),
    ]
    out_specs = (
        pl.BlockSpec((tile_n, 2), lambda i: (i, 0)),       # fused [y0, y1]
        pl.BlockSpec((tile_n, h_dim), lambda i: (i, 0)),   # rep = phi_x
    )
    out_shape = (
        jax.ShapeDtypeStruct((N, 2), jnp.float32),
        jax.ShapeDtypeStruct((N, h_dim), rep_dtype),
    )

    # Advisory cost estimate for XLA's scheduler.
    rep_itemsize = jnp.dtype(rep_dtype).itemsize
    flops = 2 * N * (x_dim * h_dim + h_dim * g_dim + g_dim * g_dim
                     + (h_dim + g_dim) * 2)
    bytes_accessed = (
        N * (x_dim + 1) * 4                     # f32 row inputs read
        + N * h_dim * rep_itemsize + N * 2 * 4  # row outputs written
        + 2 * (x_dim * h_dim + h_dim * g_dim + g_dim * g_dim
               + (h_dim + g_dim) * 2)           # bf16 weights
        + 4 * (h_dim + 2 * g_dim + 2)           # f32 biases
    )

    y, rep = pl.pallas_call(
        graphsci_kernel,
        out_shape=out_shape,
        grid_spec=pltpu.PrefetchScalarGridSpec(
            num_scalar_prefetch=0,
            grid=(n_tiles,),
            in_specs=in_specs,
            out_specs=out_specs,
        ),
        compiler_params=pltpu.CompilerParams(
            dimension_semantics=("parallel",),      # megacore on v7x
            vmem_limit_bytes=32 * 1024 * 1024,      # safe across v5e/v6e/v7x
        ),
        cost_estimate=pl.CostEstimate(
            flops=flops, transcendentals=0, bytes_accessed=bytes_accessed),
    )(*inputs)

    return {
        "y1_pred": y[:, 1],
        "y0_pred": y[:, 0],
        "rep": rep,
    }


def make_linear(key, fan_in, fan_out):
    """PyTorch nn.Linear default init: U(-1/sqrt(fan_in), 1/sqrt(fan_in)).
    Returned W is (in, out), i.e. already transposed for x @ W."""
    kw, kb = jax.random.split(key)
    bound = 1.0 / (fan_in ** 0.5)
    W = jax.random.uniform(kw, (fan_in, fan_out), jnp.float32, -bound, bound)
    b = jax.random.uniform(kb, (1, fan_out), jnp.float32, -bound, bound)
    return W, b


if __name__ == "__main__":
    # Small demo shapes; N deliberately NOT a multiple of the tile so the
    # ragged-last-tile (masked) path is exercised.  With the default tile
    # policy this yields tile_n=80, grid=4 (last tile has 60 live rows).
    N, X_DIM, H_DIM, G_DIM = 300, 16, 32, 32
    Y_REP_DIM = H_DIM + G_DIM  # skip_type '23'

    key = jax.random.PRNGKey(0)
    k_feat, k_treat, k1, k2, k3, k4, k5 = jax.random.split(key, 7)

    features = jax.random.normal(k_feat, (N, X_DIM), jnp.float32)
    treatments = jax.random.bernoulli(k_treat, 0.5, (N,)).astype(jnp.float32)

    Wphi, bphi = make_linear(k1, X_DIM, H_DIM)   # phi_x (phi_layer=1)
    Wg1, bg1 = make_linear(k2, H_DIM, G_DIM)     # gnn (mlp encoder)
    Wg2, bg2 = make_linear(k3, G_DIM, G_DIM)     # gnn_more[0]
    W01, b01 = make_linear(k4, Y_REP_DIM, 1)     # out_t01
    W11, b11 = make_linear(k5, Y_REP_DIM, 1)     # out_t11

    params = dict(Wphi=Wphi, bphi=bphi, Wg1=Wg1, bg1=bg1, Wg2=Wg2, bg2=bg2,
                  W01=W01, b01=b01, W11=W11, b11=b11)

    out = graphsci_forward(features, treatments, params)
    jax.block_until_ready(out)

    # Pure-JAX f32 reference (kernel uses bf16 matmul operands with f32
    # accumulation and emits rep in bf16, so tolerances are relaxed).
    phi_x = features @ Wphi + bphi
    g = jnp.maximum((treatments[:, None] * phi_x) @ Wg1 + bg1, 0.0)
    g = jnp.maximum(g @ Wg2 + bg2, 0.0)
    y0_ref = (jnp.concatenate([jnp.zeros_like(phi_x), g], axis=1) @ W01
              + b01).reshape(-1)
    y1_ref = (jnp.concatenate([phi_x, g], axis=1) @ W11 + b11).reshape(-1)

    assert out["rep"].shape == (N, H_DIM)
    assert out["rep"].dtype == jnp.bfloat16
    assert out["y0_pred"].shape == (N,) and out["y1_pred"].shape == (N,)
    assert jnp.allclose(out["rep"].astype(jnp.float32), phi_x,
                        atol=5e-2, rtol=5e-2)
    assert jnp.allclose(out["y0_pred"], y0_ref, atol=5e-2, rtol=5e-2)
    assert jnp.allclose(out["y1_pred"], y1_ref, atol=5e-2, rtol=5e-2)

    print("KERNEL_OK")
</pallas_src>

<mosaic_0001>
module attributes {stable_mosaic.version = 11 : i64} {
  func.func @graphsci_kernel(%arg0: i32, %arg1: memref<80x16xf32, #tpu.memory_space<vmem>>, %arg2: memref<80x1xf32, #tpu.memory_space<vmem>>, %arg3: memref<16x32xbf16, #tpu.memory_space<vmem>>, %arg4: memref<1x32xf32, #tpu.memory_space<vmem>>, %arg5: memref<32x32xbf16, #tpu.memory_space<vmem>>, %arg6: memref<1x32xf32, #tpu.memory_space<vmem>>, %arg7: memref<32x32xbf16, #tpu.memory_space<vmem>>, %arg8: memref<1x32xf32, #tpu.memory_space<vmem>>, %arg9: memref<32x2xbf16, #tpu.memory_space<vmem>>, %arg10: memref<32x2xbf16, #tpu.memory_space<vmem>>, %arg11: memref<1x2xf32, #tpu.memory_space<vmem>>, %arg12: memref<80x2xf32, #tpu.memory_space<vmem>>, %arg13: memref<80x32xbf16, #tpu.memory_space<vmem>>) attributes {dimension_semantics = [#tpu.dimension_semantics<parallel>], iteration_bounds = array<i64: 4>, scalar_prefetch = 0 : i64, scratch_operands = 0 : i64, tpu.core_type = #tpu.core_type<tc>, window_params = [{transform_indices = @transform_0, window_bounds = array<i64: 80, 16>}, {transform_indices = @transform_1, window_bounds = array<i64: 80, 1>}, {pipeline_mode = #tpu.pipeline_mode<synchronous>, transform_indices = @transform_2, window_bounds = array<i64: 16, 32>}, {pipeline_mode = #tpu.pipeline_mode<synchronous>, transform_indices = @transform_3, window_bounds = array<i64: 1, 32>}, {pipeline_mode = #tpu.pipeline_mode<synchronous>, transform_indices = @transform_4, window_bounds = array<i64: 32, 32>}, {pipeline_mode = #tpu.pipeline_mode<synchronous>, transform_indices = @transform_5, window_bounds = array<i64: 1, 32>}, {pipeline_mode = #tpu.pipeline_mode<synchronous>, transform_indices = @transform_6, window_bounds = array<i64: 32, 32>}, {pipeline_mode = #tpu.pipeline_mode<synchronous>, transform_indices = @transform_7, window_bounds = array<i64: 1, 32>}, {pipeline_mode = #tpu.pipeline_mode<synchronous>, transform_indices = @transform_8, window_bounds = array<i64: 32, 2>}, {pipeline_mode = #tpu.pipeline_mode<synchronous>, transform_indices = @transform_9, window_bounds = array<i64: 32, 2>}, {pipeline_mode = #tpu.pipeline_mode<synchronous>, transform_indices = @transform_10, window_bounds = array<i64: 1, 2>}, {transform_indices = @transform_11, window_bounds = array<i64: 80, 2>}, {transform_indices = @transform_12, window_bounds = array<i64: 80, 32>}]} {
    %c0 = arith.constant 0 : index
    %c0_0 = arith.constant 0 : index
    %0 = vector.load %arg1[%c0, %c0_0] : memref<80x16xf32, #tpu.memory_space<vmem>>, vector<80x16xf32>
    %1 = arith.truncf %0 : vector<80x16xf32> to vector<80x16xbf16>
    %c0_1 = arith.constant 0 : index
    %c0_2 = arith.constant 0 : index
    %2 = vector.load %arg3[%c0_1, %c0_2] : memref<16x32xbf16, #tpu.memory_space<vmem>>, vector<16x32xbf16>
    %cst = arith.constant dense<0.000000e+00> : vector<80x32xf32>
    %3 = tpu.matmul %1, %2, %cst {dimension_numbers = #tpu.dot_dimension_numbers<[1], [0], [0], [1], [0, 0, 1, 1], [], []>} : vector<80x16xbf16>, vector<16x32xbf16>, vector<80x32xf32> -> vector<80x32xf32>
    %c0_3 = arith.constant 0 : index
    %c0_4 = arith.constant 0 : index
    %4 = vector.load %arg4[%c0_3, %c0_4] : memref<1x32xf32, #tpu.memory_space<vmem>>, vector<1x32xf32>
    %5 = vector.broadcast %4 : vector<1x32xf32> to vector<80x32xf32>
    %6 = arith.addf %3, %5 : vector<80x32xf32>
    %7 = arith.truncf %6 : vector<80x32xf32> to vector<80x32xbf16>
    %c0_5 = arith.constant 0 : index
    %c0_6 = arith.constant 0 : index
    %8 = vector.load %arg13[%c0_5, %c0_6] : memref<80x32xbf16, #tpu.memory_space<vmem>>, vector<80x32xbf16>
    tpu.vector_store %arg13[%c0_5, %c0_6], %7 {strides = array<i32>} : memref<80x32xbf16, #tpu.memory_space<vmem>>, vector<80x32xbf16>,
    %9 = arith.truncf %6 : vector<80x32xf32> to vector<80x32xbf16>
    %c0_7 = arith.constant 0 : index
    %c0_8 = arith.constant 0 : index
    %10 = vector.load %arg2[%c0_7, %c0_8] : memref<80x1xf32, #tpu.memory_space<vmem>>, vector<80x1xf32>
    %11 = vector.broadcast %10 : vector<80x1xf32> to vector<80x32xf32>
    %12 = arith.mulf %11, %6 : vector<80x32xf32>
    %13 = arith.truncf %12 : vector<80x32xf32> to vector<80x32xbf16>
    %c0_9 = arith.constant 0 : index
    %c0_10 = arith.constant 0 : index
    %14 = vector.load %arg5[%c0_9, %c0_10] : memref<32x32xbf16, #tpu.memory_space<vmem>>, vector<32x32xbf16>
    %cst_11 = arith.constant dense<0.000000e+00> : vector<80x32xf32>
    %15 = tpu.matmul %13, %14, %cst_11 {dimension_numbers = #tpu.dot_dimension_numbers<[1], [0], [0], [1], [0, 0, 1, 1], [], []>} : vector<80x32xbf16>, vector<32x32xbf16>, vector<80x32xf32> -> vector<80x32xf32>
    %c0_12 = arith.constant 0 : index
    %c0_13 = arith.constant 0 : index
    %16 = vector.load %arg6[%c0_12, %c0_13] : memref<1x32xf32, #tpu.memory_space<vmem>>, vector<1x32xf32>
    %17 = vector.broadcast %16 : vector<1x32xf32> to vector<80x32xf32>
    %18 = arith.addf %15, %17 : vector<80x32xf32>
    %cst_14 = arith.constant 0.000000e+00 : f32
    %19 = vector.broadcast %cst_14 : f32 to vector<80x32xf32>
    %20 = arith.maximumf %18, %19 : vector<80x32xf32>
    %21 = arith.truncf %20 : vector<80x32xf32> to vector<80x32xbf16>
    %c0_15 = arith.constant 0 : index
    %c0_16 = arith.constant 0 : index
    %22 = vector.load %arg7[%c0_15, %c0_16] : memref<32x32xbf16, #tpu.memory_space<vmem>>, vector<32x32xbf16>
    %cst_17 = arith.constant dense<0.000000e+00> : vector<80x32xf32>
    %23 = tpu.matmul %21, %22, %cst_17 {dimension_numbers = #tpu.dot_dimension_numbers<[1], [0], [0], [1], [0, 0, 1, 1], [], []>} : vector<80x32xbf16>, vector<32x32xbf16>, vector<80x32xf32> -> vector<80x32xf32>
    %c0_18 = arith.constant 0 : index
    %c0_19 = arith.constant 0 : index
    %24 = vector.load %arg8[%c0_18, %c0_19] : memref<1x32xf32, #tpu.memory_space<vmem>>, vector<1x32xf32>
    %25 = vector.broadcast %24 : vector<1x32xf32> to vector<80x32xf32>
    %26 = arith.addf %23, %25 : vector<80x32xf32>
    %cst_20 = arith.constant 0.000000e+00 : f32
    %27 = vector.broadcast %cst_20 : f32 to vector<80x32xf32>
    %28 = arith.maximumf %26, %27 : vector<80x32xf32>
    %29 = arith.truncf %28 : vector<80x32xf32> to vector<80x32xbf16>
    %c0_21 = arith.constant 0 : index
    %c0_22 = arith.constant 0 : index
    %30 = vector.load %arg9[%c0_21, %c0_22] : memref<32x2xbf16, #tpu.memory_space<vmem>>, vector<32x2xbf16>
    %cst_23 = arith.constant dense<0.000000e+00> : vector<80x2xf32>
    %31 = tpu.matmul %9, %30, %cst_23 {dimension_numbers = #tpu.dot_dimension_numbers<[1], [0], [0], [1], [0, 0, 1, 1], [], []>} : vector<80x32xbf16>, vector<32x2xbf16>, vector<80x2xf32> -> vector<80x2xf32>
    %c0_24 = arith.constant 0 : index
    %c0_25 = arith.constant 0 : index
    %32 = vector.load %arg10[%c0_24, %c0_25] : memref<32x2xbf16, #tpu.memory_space<vmem>>, vector<32x2xbf16>
    %cst_26 = arith.constant dense<0.000000e+00> : vector<80x2xf32>
    %33 = tpu.matmul %29, %32, %cst_26 {dimension_numbers = #tpu.dot_dimension_numbers<[1], [0], [0], [1], [0, 0, 1, 1], [], []>} : vector<80x32xbf16>, vector<32x2xbf16>, vector<80x2xf32> -> vector<80x2xf32>
    %34 = arith.addf %31, %33 : vector<80x2xf32>
    %c0_27 = arith.constant 0 : index
    %c0_28 = arith.constant 0 : index
    %35 = vector.load %arg11[%c0_27, %c0_28] : memref<1x2xf32, #tpu.memory_space<vmem>>, vector<1x2xf32>
    %36 = vector.broadcast %35 : vector<1x2xf32> to vector<80x2xf32>
    %37 = arith.addf %34, %36 : vector<80x2xf32>
    %c0_29 = arith.constant 0 : index
    %c0_30 = arith.constant 0 : index
    %38 = vector.load %arg12[%c0_29, %c0_30] : memref<80x2xf32, #tpu.memory_space<vmem>>, vector<80x2xf32>
    tpu.vector_store %arg12[%c0_29, %c0_30], %37 {strides = array<i32>} : memref<80x2xf32, #tpu.memory_space<vmem>>, vector<80x2xf32>,
    return
  }
  func.func @transform_0(%arg0: i32) -> (i32, i32) {
    %c0_i32 = arith.constant 0 : i32
    %c0_i32_0 = arith.constant 0 : i32
    return %arg0, %c0_i32 : i32, i32
  }
  func.func @transform_1(%arg0: i32) -> (i32, i32) {
    %c0_i32 = arith.constant 0 : i32
    %c0_i32_0 = arith.constant 0 : i32
    return %arg0, %c0_i32 : i32, i32
  }
  func.func @transform_2(%arg0: i32) -> (i32, i32) {
    %c0_i32 = arith.constant 0 : i32
    %c0_i32_0 = arith.constant 0 : i32
    %c0_i32_1 = arith.constant 0 : i32
    return %c0_i32, %c0_i32_0 : i32, i32
  }
  func.func @transform_3(%arg0: i32) -> (i32, i32) {
    %c0_i32 = arith.constant 0 : i32
    %c0_i32_0 = arith.constant 0 : i32
    %c0_i32_1 = arith.constant 0 : i32
    return %c0_i32, %c0_i32_0 : i32, i32
  }
  func.func @transform_4(%arg0: i32) -> (i32, i32) {
    %c0_i32 = arith.constant 0 : i32
    %c0_i32_0 = arith.constant 0 : i32
    %c0_i32_1 = arith.constant 0 : i32
    return %c0_i32, %c0_i32_0 : i32, i32
  }
  func.func @transform_5(%arg0: i32) -> (i32, i32) {
    %c0_i32 = arith.constant 0 : i32
    %c0_i32_0 = arith.constant 0 : i32
    %c0_i32_1 = arith.constant 0 : i32
    return %c0_i32, %c0_i32_0 : i32, i32
  }
  func.func @transform_6(%arg0: i32) -> (i32, i32) {
    %c0_i32 = arith.constant 0 : i32
    %c0_i32_0 = arith.constant 0 : i32
    %c0_i32_1 = arith.constant 0 : i32
    return %c0_i32, %c0_i32_0 : i32, i32
  }
  func.func @transform_7(%arg0: i32) -> (i32, i32) {
    %c0_i32 = arith.constant 0 : i32
    %c0_i32_0 = arith.constant 0 : i32
    %c0_i32_1 = arith.constant 0 : i32
    return %c0_i32, %c0_i32_0 : i32, i32
  }
  func.func @transform_8(%arg0: i32) -> (i32, i32) {
    %c0_i32 = arith.constant 0 : i32
    %c0_i32_0 = arith.constant 0 : i32
    %c0_i32_1 = arith.constant 0 : i32
    return %c0_i32, %c0_i32_0 : i32, i32
  }
  func.func @transform_9(%arg0: i32) -> (i32, i32) {
    %c0_i32 = arith.constant 0 : i32
    %c0_i32_0 = arith.constant 0 : i32
    %c0_i32_1 = arith.constant 0 : i32
    return %c0_i32, %c0_i32_0 : i32, i32
  }
  func.func @transform_10(%arg0: i32) -> (i32, i32) {
    %c0_i32 = arith.constant 0 : i32
    %c0_i32_0 = arith.constant 0 : i32
    %c0_i32_1 = arith.constant 0 : i32
    return %c0_i32, %c0_i32_0 : i32, i32
  }
  func.func @transform_11(%arg0: i32) -> (i32, i32) {
    %c0_i32 = arith.constant 0 : i32
    %c0_i32_0 = arith.constant 0 : i32
    return %arg0, %c0_i32 : i32, i32
  }
  func.func @transform_12(%arg0: i32) -> (i32, i32) {
    %c0_i32 = arith.constant 0 : i32
    %c0_i32_0 = arith.constant 0 : i32
    return %arg0, %c0_i32 : i32, i32
  }
}

</mosaic_0001>

<bundles_post_ra>
// kernel: tpu_custom_call.1
= control target key start
LH: loop header
LB: loop body
LE: loop exit
PB: predicated region body
PF: predicated region fallthrough
CT: control target
= control target key end

     0   :  { %s2793_s0 = inlined_call_operand.vmem [shape: f32[300,16], index: 0, kind: input, shape index: {}]   ;;  %s2794_s1 = inlined_call_operand.vmem [shape: f32[300,1], index: 1, kind: input, shape index: {}]   ;;  %s2795_s2 = inlined_call_operand.vmem [shape: bf16[16,32], index: 2, kind: input, shape index: {}]   ;;  %s2796_s3 = inlined_call_operand.vmem [shape: f32[1,32], index: 3, kind: input, shape index: {}]   ;;  %s2797_s4 = inlined_call_operand.vmem [shape: bf16[32,32], index: 4, kind: input, shape index: {}]   ;;  %s2798_s5 = inlined_call_operand.vmem [shape: f32[1,32], index: 5, kind: input, shape index: {}]   ;;  %s2799_s6 = inlined_call_operand.vmem [shape: bf16[32,32], index: 6, kind: input, shape index: {}]   ;;  %s2800_s7 = inlined_call_operand.vmem [shape: f32[1,32], index: 7, kind: input, shape index: {}]   ;;  %s2801_s8 = inlined_call_operand.vmem [shape: bf16[32,2], index: 8, kind: input, shape index: {}]   ;;  %s2802_s9 = inlined_call_operand.vmem [shape: bf16[32,2], index: 9, kind: input, shape index: {}]   ;;  %s2803_s10 = inlined_call_operand.vmem [shape: f32[1,2], index: 10, kind: input, shape index: {}]   ;;  %s2804_s11 = inlined_call_operand.vmem [shape: f32[300,2], index: 11, kind: output, shape index: {0}]   ;;  %s2805_s12 = inlined_call_operand.vmem [shape: bf16[300,32], index: 12, kind: output, shape index: {1}]  }
   0x1   :  { %2806 = sst [smem:[#allocation4_spill]] %s2793_s0 }
   0x2   :  { %2807 = sst [smem:[#allocation5_spill]] %s2794_s1 }
   0x3   :  { %2808 = sst [smem:[#allocation6_spill]] %s2795_s2 }
   0x4   :  { %2809 = sst [smem:[#allocation7_spill]] %s2796_s3 }
   0x5   :  { %2810 = sst [smem:[#allocation8_spill]] %s2797_s4 }
   0x6   :  { %2811 = sst [smem:[#allocation9_spill]] %s2798_s5 }
   0x7   :  { %s2361_s21 = smov 0   ;;  %s2363_s22 = smov 0  }
   0x8   :  { %s2365_s23 = smov 0  }
   0x9 LB: > { %s2374_s24 = sadd.s32 4294967295, %s2227_s23   ;;  %s2376_s25 = sadd.s32 1, %s2227_s23   ;;  %s2227_s23 = sphi %s2365_s23, %s2827_s23   ;;  %s2223_s22 = sphi %s2363_s22, %s2826_s22   ;;  %s2219_s21 = sphi %s2361_s21, %s2825_s21  }
   0xa   : > { %s268_s26 = ssub.s32 %s2227_s23, %s2376_s25  ;;  %s271_s27 = sadd.s32 1, %s2223_s22 }
   0xb   : > { %p269_p0 = scmp.eq.s32.totalorder %s268_s26, 0  ;;  %p281_p1 = scmp.ne.s32.totalorder %s2223_s22, %s2219_s21 }
   0xc   : > { %p282_p2 = scmp.eq.s32.totalorder %s2374_s24, 3  ;;  %p1724_p3 = scmp.ge.s32.totalorder %s2227_s23, 1 }
   0xd   : > { %s2384_s28 = scalar_select %p269_p0, %s2223_s22, %s271_s27  }
   0xe   : > { %p2386_p4 = por %p282_p2, %p281_p1  ;;  %p393_p5 = scmp.lt.s32.totalorder %s2227_s23, 5 }
  0x10   : > { %p394_p6 = pnand %p1724_p3, %p393_p5 }
  0x11   : > { %s2813_s2 = sld [smem:[#allocation6_spill]] (!%p394_p6)  ;;  %s2396_s14 = smul.u32 (!%p394_p6), 10, %s2374_s24 }
  0x12   : > { %397 = sbr.rel (%p394_p6) target bundleno = 991 (0x3df), region = 64  ;;  %s2814_s0 = sld [smem:[#allocation4_spill]] (!%p394_p6) }
  0x13   : > { %p456_p7 = scmp.lt.s32.totalorder (!%p394_p6), %s2396_s14, 37  ;;  %s2815_s1 = sld [smem:[#allocation5_spill]] (!%p394_p6) }
  0x14   : > { %s2816_s4 = sld [smem:[#allocation8_spill]] (!%p394_p6)  ;;  %s442_s20 = sand.u32 (!%p394_p6), 1, %s2219_s21  }
  0x15   : > { %s1964_s23 = smul.u32 (!%p394_p6), 40, %s442_s20  ;;  %s2817_s3 = sld [smem:[#allocation7_spill]] (!%p394_p6) }
  0x16   : > { %s2818_s5 = sld [smem:[#allocation9_spill]] (!%p394_p6)  ;;  %s1963_s17 = smul.u32 (!%p394_p6), 80, %s442_s20 }
  0x17   : > { %v2124_v0 = vld [vmem:[%s2813_s2] sm:$0xff]   ;;  %v2293_v1 = vmov 0.0   ;;  %vm2294_vm0 = vmmov 0   ;;  %v2295_v2 = vmov 0   ;;  %s457_s15 = scalar_select %p456_p7, %s2396_s14, 37  ;;  %vm520_vm1 = vcmask 130048  }
  0x18   : > { %1843 = vmatprep.subr.bf16.mxu0 %v2293_v1  ;;  %1961 = vmatprep.subr.bf16.mxu1 %v2293_v1  ;;  %v2127_v30 = vld [vmem:[%s2799_s6 + $0x8] sm:$0xff]   ;;  %v2128_v31 = vld [vmem:[%s2799_s6] sm:$0xff]   ;;  %vm649_vm2 = vcmask 257024   ;;  %s2485_s30 = scalar_lea.vmem [#allocation3], %s1964_s23   ;;  %vm758_vm3 = vcmask 261120   ;;  %vm1213_vm4 = vcmask 15360  }
  0x19   : > { %1844 = vmatpush3.bf16.msra.mxu0 %v2124_v0  ;;  %1962 = vmatpush3.bf16.msra.mxu1 %v2124_v0  ;;  %s1725_s16 = sshll.u32 %s457_s15, 3  ;;  %s2663_s23 = scalar_lea.vmem [#allocation2], %s1963_s17  }
  0x1a   : > { %1845 = vmatprep.mubr.msk.bf16.mxu0 %vm2294_vm0, %v2293_v1  ;;  %1857 = vmatprep.mubr.msk.bf16.mxu1 %vm2294_vm0, %v2293_v1  ;;  %s2409_s19 = scalar_lea.vmem %s2814_s0, %s1725_s16  ;;  %s2417_s26 = scalar_lea.vmem %s2815_s1, %s1725_s16  ;;  %v2125_v19 = vld [vmem:[%s2816_s4 + $0x8] sm:$0xff]   ;;  %v2126_v29 = vld [vmem:[%s2816_s4] sm:$0xff]  }
  0x1b   : > { %2122 = vset.pattern.permute.xlu0 %v2295_v2  ;;  %2123 = vset.pattern.permute.xlu1 %v2295_v2  ;;  %v490_v3 = vld [vmem:[%s2409_s19] sm:$0xff]  ;;  %v491_v4 = vld [vmem:[%s2409_s19 + $0x8] sm:$0xff]  ;;  %v496_v5 = vld [vmem:[%s2409_s19 + $0x30] sm:$0xff]  ;;  %s1236_s21 = ssub.s32 (%p2386_p4), 38, %s2396_s14  ;;  %s1807_s20 = smul.u32 (%p2386_p4), 80, %s2374_s24 }
  0x1c   : > { %1865 = vmatprep.subr.bf16.mxu1 %v2293_v1  ;;  %1889 = vmatprep.subr.bf16.mxu0 %v2293_v1  ;;  %v500_v6 = vpack.c.bf16 %v491_v4, %v490_v3  ;;  %v497_v7 = vld [vmem:[%s2409_s19 + $0x38] sm:$0xff]  ;;  %v660_v9 = vld [vmem:[%s2417_s26] sm:$0xff]  ;;  %v492_v10 = vld [vmem:[%s2409_s19 + $0x10] sm:$0xff]  ;;  %p1237_p8 = scmp.lt.s32.totalorder (%p2386_p4), %s1236_s21, 10 }
  0x1d   : > { %v503_v8 = vpack.c.bf16 %v497_v7, %v496_v5  ;;  %v493_v11 = vld [vmem:[%s2409_s19 + $0x18] sm:$0xff]  ;;  %v662_v12 = vld [vmem:[%s2417_s26 + $0x10] sm:$0xff]  ;;  %v498_v13 = vld [vmem:[%s2409_s19 + $0x40] sm:$0xff]  ;;  %672 = vperm.xlu0 %2122, %v660_v9   ;;  %s2692_s13 = scalar_lea.vmem (%p2386_p4), %s2804_s11, %s1807_s20  }
  0x1e   : > { %1846 = vmatmul.mubr.msk.bf16.vlgmr.msra.gmra.mxu0 %vm520_vm1, %v500_v6  ;;  %v499_v14 = vld [vmem:[%s2409_s19 + $0x48] sm:$0xff]  ;;  %682 = vperm.xlu1 %2123, %v662_v12   ;;  %v501_v16 = vpack.c.bf16 %v493_v11, %v492_v10  ;;  %v663_v17 = vld [vmem:[%s2417_s26 + $0x18] sm:$0xff]  ;;  %v664_v20 = vld [vmem:[%s2417_s26 + $0x20] sm:$0xff] }
  0x1f   : > { %1858 = vmatmul.mubr.msk.bf16.vlgmr.msra.gmra.mxu1 %vm520_vm1, %v503_v8  ;;  %1849 = vmatprep.mubr.msk.bf16.mxu0 %vm2294_vm0, %v2293_v1  ;;  %v661_v15 = vld [vmem:[%s2417_s26 + $0x8] sm:$0xff]  ;;  %v504_v18 = vpack.c.bf16 %v499_v14, %v498_v13  ;;  %v494_v22 = vld [vmem:[%s2409_s19 + $0x20] sm:$0xff]  ;;  %v666_v24 = vld [vmem:[%s2417_s26 + $0x30] sm:$0xff] }
  0x20   : > { %1861 = vmatprep.mubr.msk.bf16.mxu1 %vm2294_vm0, %v2293_v1  ;;  %1866 = vmatpush3.bf16.msra.mxu1 %v2125_v19  ;;  %v665_v21 = vld [vmem:[%s2417_s26 + $0x28] sm:$0xff]  ;;  %v667_v26 = vld [vmem:[%s2417_s26 + $0x38] sm:$0xff]  ;;  %v668_v27 = vld [vmem:[%s2417_s26 + $0x40] sm:$0xff] }
  0x21   : > { %677 = vperm.xlu0 %2122, %v661_v15   ;;  %1867 = vmatprep.subr.bf16.mxu1 %v2293_v1  ;;  %v495_v23 = vld [vmem:[%s2409_s19 + $0x28] sm:$0xff]  ;;  %v2473_v32 = vld [vmem:[%s2817_s3] ss:$0 sm:$0xff] }
  0x22   : > { %687 = vperm.xlu1 %2123, %v663_v17   ;;  %v502_v25 = vpack.c.bf16 %v495_v23, %v494_v22  ;;  %v669_v28 = vld [vmem:[%s2417_s26 + $0x48] sm:$0xff]  ;;  %1890 = vmatpush3.bf16.msra.mxu0 %v2127_v30 }
  0x23   : > { %1891 = vmatprep.subr.bf16.mxu0 %v2293_v1 }
  0x24   : > { %1868 = vmatpush3.bf16.msra.mxu1 %v2126_v29 }
  0x25   : > { %692 = vperm.xlu0 %2122, %v664_v20   ;;  %1913 = vmatprep.subr.bf16.mxu1 %v2293_v1 }
  0x26   : > { %1850 = vmatmul.mubr.msk.bf16.gmra.mxu0 %vm520_vm1, %v501_v16  ;;  %697 = vperm.xlu1 %2123, %v665_v21  }
  0x27   : > { %1862 = vmatmul.mubr.msk.bf16.gmra.mxu1 %vm520_vm1, %v504_v18  ;;  %1853 = vmatprep.mubr.msk.bf16.mxu0 %vm2294_vm0, %v2293_v1 }
  0x28   : > { %1869 = vmatprep.mubr.msk.bf16.mxu1 %vm2294_vm0, %v2293_v1  ;;  %1892 = vmatpush3.bf16.msra.mxu0 %v2128_v31 }
  0x29   : > { %702 = vperm.xlu0 %2122, %v666_v24   ;;  %1937 = vmatprep.subr.bf16.mxu0 %v2293_v1 }
  0x2a   : > { %707 = vperm.xlu1 %2123, %v667_v26  }
  0x2d   : > { %712 = vperm.xlu0 %2122, %v668_v27  }
  0x2e   : > { %1854 = vmatmul.mubr.msk.bf16.gmra.mxu0 %vm520_vm1, %v502_v25  ;;  %717 = vperm.xlu1 %2123, %v669_v28  }
  0x2f   : > { %1893 = vmatprep.mubr.msk.bf16.mxu0 %vm2294_vm0, %v2293_v1 }
  0x98   : > { %v673_v33 = vpop.permute.xlu0 %672 }
  0x99   : > { %v683_v53 = vpop.permute.xlu1 %682 }
  0x9c   : > { %v678_v45 = vpop.permute.xlu0 %677 }
  0x9d   : > { %v688_v5 = vpop.permute.xlu1 %687 }
  0xa0   : > { %v693_v23 = vpop.permute.xlu0 %692 }
  0xa1   : > { %v698_v20 = vpop.permute.xlu1 %697 }
  0xa5   : > { %v708_v30 = vpop.permute.xlu1 %707 }
  0xde   : > { %v570_v34 = vpop.f32.mrf.mxu0 }
  0xdf   : > { %v2476_v35 = vadd.f32 %v2473_v32, %v570_v34  ;;  %v594_v36 = vpop.f32.mrf.mxu1 }
  0xe0   : > { %v2479_v37 = vadd.f32 %v2473_v32, %v594_v36  ;;  %v1847_v38 = vpop.f32.mrf.mxu0  ;;  %v718_v36 = vpop.permute.xlu1 %717 }
  0xe1   : > { %v1797_v39 = vpack.c.bf16 %v2476_v35, %v2476_v35  ;;  %v1859_v40 = vpop.f32.mrf.mxu1  ;;  %v720_v48 = vmul.f32 %v673_v33, %v2476_v35 }
  0xe2   : > { %v1803_v41 = vpack.c.bf16 %v2479_v37, %v2479_v37  ;;  %v573_v42 = vpop.f32.mrf.mxu0 }
  0xe3   : > { %650 = vst.msk [vmem:[%s2485_s30] sm:$0xf] %vm649_vm2, %v1797_v39  ;;  %v2490_v43 = vadd.f32 %v2473_v32, %v573_v42  ;;  %v597_v44 = vpop.f32.mrf.mxu1  ;;  %v2131_v42 = vld [vmem:[%s2802_s9 + $0x8] sm:$0xff]  }
  0xe4   : > { %656 = vst.msk [vmem:[%s2485_s30 + $0x18] sm:$0xf] %vm649_vm2, %v1803_v41  ;;  %v2495_v46 = vadd.f32 %v2473_v32, %v597_v44  ;;  %v1848_v47 = vpop.f32.mrf.mxu0  ;;  %v2132_v44 = vld [vmem:[%s2802_s9] sm:$0xff]  }
  0xe5   : > { %v609_v49 = vpack.c.bf16 %v2490_v43, %v2476_v35  ;;  %v1798_v50 = vpack.c.bf16 %v2490_v43, %v2490_v43  ;;  %v721_v51 = vmul.f32 %v678_v45, %v2490_v43  ;;  %v1860_v52 = vpop.f32.mrf.mxu1  ;;  %v1744_v45 = vld [vmem:[%s2818_s5] ss:$0 sm:$0xff] }
  0xe6   : > { %v612_v54 = vpack.c.bf16 %v2495_v46, %v2479_v37  ;;  %v1804_v55 = vpack.c.bf16 %v2495_v46, %v2495_v46  ;;  %v578_v56 = vpop.f32.mrf.mxu0  ;;  %v727_v31 = vmul.f32 %v708_v30, %v2495_v46  ;;  %v1752_v35 = vld [vmem:[%s2800_s7] ss:$0 sm:$0xff] }
  0xe7   : > { %651 = vst.msk [vmem:[%s2485_s30 + $0x4] sm:$0xf] %vm649_vm2, %v1798_v50  ;;  %v730_v57 = vpack.c.bf16 %v721_v51, %v720_v48  ;;  %v2510_v58 = vadd.f32 %v2473_v32, %v578_v56  ;;  %v602_v59 = vpop.f32.mrf.mxu1 }
  0xe8   : > { %657 = vst.msk [vmem:[%s2485_s30 + $0x1c] sm:$0xf] %vm649_vm2, %v1804_v55  ;;  %v2515_v60 = vadd.f32 %v2473_v32, %v602_v59  ;;  %v1851_v61 = vpop.f32.mrf.mxu0  ;;  %v2129_v59 = vld [vmem:[%s2801_s8 + $0x8] sm:$0xff]  }
  0xe9   : > { %v1799_v62 = vpack.c.bf16 %v2510_v58, %v2510_v58  ;;  %v1863_v63 = vpop.f32.mrf.mxu1  ;;  %1870 = vmatmul.mubr.msk.bf16.vlgmr.msra.gmra.mxu1 %vm758_vm3, %v730_v57  ;;  %v722_v8 = vmul.f32 %v683_v53, %v2510_v58 }
  0xea   : > { %v1805_v0 = vpack.c.bf16 %v2515_v60, %v2515_v60  ;;  %v581_v2 = vpop.f32.mrf.mxu0  ;;  %1873 = vmatprep.mubr.msk.bf16.mxu1 %vm2294_vm0, %v2293_v1  ;;  %1914 = vmatpush3.bf16.msra.mxu1 %v2131_v42 }
  0xeb   : > { %652 = vst.msk [vmem:[%s2485_s30 + $0x8] sm:$0xf] %vm649_vm2, %v1799_v62  ;;  %v2527_v3 = vadd.f32 %v2473_v32, %v581_v2  ;;  %v605_v4 = vpop.f32.mrf.mxu1  ;;  %1915 = vmatprep.subr.bf16.mxu1 %v2293_v1  ;;  %v2130_v2 = vld [vmem:[%s2801_s8] sm:$0xff]  }
  0xec   : > { %658 = vst.msk [vmem:[%s2485_s30 + $0x20] sm:$0xf] %vm649_vm2, %v1805_v0  ;;  %v2532_v6 = vadd.f32 %v2473_v32, %v605_v4  ;;  %v1852_v7 = vpop.f32.mrf.mxu0 }
  0xed   : > { %v610_v9 = vpack.c.bf16 %v2527_v3, %v2510_v58  ;;  %v1800_v10 = vpack.c.bf16 %v2527_v3, %v2527_v3  ;;  %v723_v11 = vmul.f32 %v688_v5, %v2527_v3  ;;  %v1864_v12 = vpop.f32.mrf.mxu1 }
  0xee   : > { %v613_v13 = vpack.c.bf16 %v2532_v6, %v2515_v60  ;;  %v1806_v14 = vpack.c.bf16 %v2532_v6, %v2532_v6  ;;  %v586_v15 = vpop.f32.mrf.mxu0  ;;  %v729_v38 = vmul.f32 %v718_v36, %v2532_v6  ;;  %1916 = vmatpush3.bf16.msra.mxu1 %v2132_v44 }
  0xef   : > { %653 = vst.msk [vmem:[%s2485_s30 + $0xc] sm:$0xf] %vm649_vm2, %v1800_v10  ;;  %v731_v16 = vpack.c.bf16 %v723_v11, %v722_v8  ;;  %v2547_v17 = vadd.f32 %v2473_v32, %v586_v15 }
  0xf0   : > { %659 = vst.msk [vmem:[%s2485_s30 + $0x24] sm:$0xf] %vm649_vm2, %v1806_v14  ;;  %v1855_v18 = vpop.f32.mrf.mxu0 }
  0xf1   : > { %v1801_v19 = vpack.c.bf16 %v2547_v17, %v2547_v17  ;;  %1874 = vmatmul.mubr.msk.bf16.gmra.mxu1 %vm758_vm3, %v731_v16  ;;  %v724_v25 = vmul.f32 %v693_v23, %v2547_v17 }
  0xf2   : > { %v589_v21 = vpop.f32.mrf.mxu0  ;;  %1877 = vmatprep.mubr.msk.bf16.mxu1 %vm2294_vm0, %v2293_v1 }
  0xf3   : > { %654 = vst.msk [vmem:[%s2485_s30 + $0x10] sm:$0xf] %vm649_vm2, %v1801_v19  ;;  %v2559_v22 = vadd.f32 %v2473_v32, %v589_v21  ;;  %v703_v32 = vpop.permute.xlu0 %702 }
  0xf4   : > { %v1856_v24 = vpop.f32.mrf.mxu0  ;;  %v726_v33 = vmul.f32 %v703_v32, %v2479_v37 }
  0xf5   : > { %v611_v26 = vpack.c.bf16 %v2559_v22, %v2547_v17  ;;  %v1802_v27 = vpack.c.bf16 %v2559_v22, %v2559_v22  ;;  %v725_v28 = vmul.f32 %v698_v20, %v2559_v22 }
  0xf6   : > { %v733_v34 = vpack.c.bf16 %v727_v31, %v726_v33 }
  0xf7   : > { %655 = vst.msk [vmem:[%s2485_s30 + $0x14] sm:$0xf] %vm649_vm2, %v1802_v27  ;;  %v732_v29 = vpack.c.bf16 %v725_v28, %v724_v25  ;;  %v713_v39 = vpop.permute.xlu0 %712 }
  0xf8   : > { %v728_v40 = vmul.f32 %v713_v39, %v2515_v60 }
  0xf9   : > { %1878 = vmatmul.mubr.msk.bf16.gmra.mxu1 %vm758_vm3, %v732_v29 }
  0xfa   : > { %1881 = vmatprep.mubr.msk.bf16.mxu1 %vm2294_vm0, %v2293_v1  ;;  %v734_v41 = vpack.c.bf16 %v729_v38, %v728_v40 }
 0x101   : > { %1882 = vmatmul.mubr.msk.bf16.gmra.mxu1 %vm758_vm3, %v733_v34 }
 0x102   : > { %1885 = vmatprep.mubr.msk.bf16.mxu1 %vm2294_vm0, %v2293_v1 }
 0x109   : > { %1886 = vmatmul.mubr.msk.bf16.gmra.mxu1 %vm758_vm3, %v734_v41 }
 0x10a   : > { %1917 = vmatprep.mubr.msk.bf16.mxu1 %vm2294_vm0, %v2293_v1 }
 0x1a9   : > { %v808_v47 = vpop.f32.mrf.mxu1 }
 0x1aa   : > { %v809_v50 = vadd.f32 %v1744_v45, %v808_v47 }
 0x1ab   : > { %v1871_v48 = vpop.f32.mrf.mxu1 }
 0x1ac   : > { %v847_v55 = vmax.f32 %v809_v50, 0.0 }
 0x1ad   : > { %v811_v51 = vpop.f32.mrf.mxu1 }
 0x1ae   : > { %v812_v52 = vadd.f32 %v1744_v45, %v811_v51 }
 0x1af   : > { %v1872_v53 = vpop.f32.mrf.mxu1 }
 0x1b0   : > { %v848_v56 = vmax.f32 %v812_v52, 0.0 }
 0x1b1   : > { %v816_v57 = vpop.f32.mrf.mxu1 }
 0x1b2   : > { %v857_v61 = vpack.c.bf16 %v848_v56, %v847_v55  ;;  %v817_v63 = vadd.f32 %v1744_v45, %v816_v57 }
 0x1b3   : > { %v1875_v62 = vpop.f32.mrf.mxu1 }
 0x1b4   : > { %1894 = vmatmul.mubr.msk.bf16.vlgmr.msra.gmra.mxu0 %vm758_vm3, %v857_v61  ;;  %v849_v7 = vmax.f32 %v817_v63, 0.0 }
 0x1b5   : > { %v819_v0 = vpop.f32.mrf.mxu1  ;;  %1897 = vmatprep.mubr.msk.bf16.mxu0 %vm2294_vm0, %v2293_v1  ;;  %1938 = vmatpush3.bf16.msra.mxu0 %v2129_v59 }
 0x1b6   : > { %v820_v4 = vadd.f32 %v1744_v45, %v819_v0  ;;  %1939 = vmatprep.subr.bf16.mxu0 %v2293_v1 }
 0x1b7   : > { %v1876_v5 = vpop.f32.mrf.mxu1 }
 0x1b8   : > { %v850_v8 = vmax.f32 %v820_v4, 0.0 }
 0x1b9   : > { %v824_v10 = vpop.f32.mrf.mxu1  ;;  %1940 = vmatpush3.bf16.msra.mxu0 %v2130_v2 }
 0x1ba   : > { %v858_v11 = vpack.c.bf16 %v850_v8, %v849_v7  ;;  %v825_v14 = vadd.f32 %v1744_v45, %v824_v10 }
 0x1bb   : > { %v1879_v12 = vpop.f32.mrf.mxu1 }
 0x1bc   : > { %1898 = vmatmul.mubr.msk.bf16.gmra.mxu0 %vm758_vm3, %v858_v11  ;;  %v851_v19 = vmax.f32 %v825_v14, 0.0 }
 0x1bd   : > { %v827_v15 = vpop.f32.mrf.mxu1  ;;  %1901 = vmatprep.mubr.msk.bf16.mxu0 %vm2294_vm0, %v2293_v1 }
 0x1be   : > { %v828_v16 = vadd.f32 %v1744_v45, %v827_v15 }
 0x1bf   : > { %v1880_v18 = vpop.f32.mrf.mxu1 }
 0x1c0   : > { %v852_v20 = vmax.f32 %v828_v16, 0.0 }
 0x1c1   : > { %v832_v21 = vpop.f32.mrf.mxu1 }
 0x1c2   : > { %v859_v23 = vpack.c.bf16 %v852_v20, %v851_v19  ;;  %v833_v25 = vadd.f32 %v1744_v45, %v832_v21 }
 0x1c3   : > { %v1883_v24 = vpop.f32.mrf.mxu1 }
 0x1c4   : > { %1902 = vmatmul.mubr.msk.bf16.gmra.mxu0 %vm758_vm3, %v859_v23  ;;  %v853_v30 = vmax.f32 %v833_v25, 0.0 }
 0x1c5   : > { %v835_v27 = vpop.f32.mrf.mxu1  ;;  %1905 = vmatprep.mubr.msk.bf16.mxu0 %vm2294_vm0, %v2293_v1 }
 0x1c6   : > { %v836_v28 = vadd.f32 %v1744_v45, %v835_v27 }
 0x1c7   : > { %v1884_v29 = vpop.f32.mrf.mxu1 }
 0x1c8   : > { %v854_v31 = vmax.f32 %v836_v28, 0.0 }
 0x1c9   : > { %v840_v32 = vpop.f32.mrf.mxu1 }
 0x1ca   : > { %v860_v33 = vpack.c.bf16 %v854_v31, %v853_v30  ;;  %v841_v36 = vadd.f32 %v1744_v45, %v840_v32 }
 0x1cb   : > { %v1887_v34 = vpop.f32.mrf.mxu1 }
 0x1cc   : > { %1906 = vmatmul.mubr.msk.bf16.gmra.mxu0 %vm758_vm3, %v860_v33  ;;  %v855_v41 = vmax.f32 %v841_v36, 0.0 }
 0x1cd   : > { %v843_v38 = vpop.f32.mrf.mxu1  ;;  %1909 = vmatprep.mubr.msk.bf16.mxu0 %vm2294_vm0, %v2293_v1 }
 0x1ce   : > { %v844_v39 = vadd.f32 %v1744_v45, %v843_v38 }
 0x1cf   : > { %v1888_v40 = vpop.f32.mrf.mxu1 }
 0x1d0   : > { %v856_v42 = vmax.f32 %v844_v39, 0.0 }
 0x1d2   : > { %v861_v44 = vpack.c.bf16 %v856_v42, %v855_v41 }
 0x1d4   : > { %1910 = vmatmul.mubr.msk.bf16.gmra.mxu0 %vm758_vm3, %v861_v44 }
 0x1d5   : > { %1941 = vmatprep.mubr.msk.bf16.mxu0 %vm2294_vm0, %v2293_v1 }
 0x1dc   : > { %1942 = vmatmul.mubr.msk.bf16.vlgmr.msra.gmra.mxu0 %vm758_vm3, %v609_v49 }
 0x1dd   : > { %1945 = vmatprep.mubr.msk.bf16.mxu0 %vm2294_vm0, %v2293_v1 }
 0x1e4   : > { %1946 = vmatmul.mubr.msk.bf16.gmra.mxu0 %vm758_vm3, %v610_v9 }
 0x1e5   : > { %1949 = vmatprep.mubr.msk.bf16.mxu0 %vm2294_vm0, %v2293_v1 }
 0x1ec   : > { %1950 = vmatmul.mubr.msk.bf16.gmra.mxu0 %vm758_vm3, %v611_v26 }
 0x1ed   : > { %1953 = vmatprep.mubr.msk.bf16.mxu0 %vm2294_vm0, %v2293_v1 }
 0x1f4   : > { %1954 = vmatmul.mubr.msk.bf16.gmra.mxu0 %vm758_vm3, %v612_v54 }
 0x1f5   : > { %1957 = vmatprep.mubr.msk.bf16.mxu0 %vm2294_vm0, %v2293_v1 }
 0x1fc   : > { %1958 = vmatmul.mubr.msk.bf16.gmra.mxu0 %vm758_vm3, %v613_v13 }
 0x274   : > { %v934_v43 = vpop.f32.mrf.mxu0 }
 0x275   : > { %v935_v58 = vadd.f32 %v1752_v35, %v934_v43 }
 0x276   : > { %v1895_v49 = vpop.f32.mrf.mxu0 }
 0x277   : > { %v973_v46 = vmax.f32 %v935_v58, 0.0  ;;  %v1774_v58 = vld [vmem:[%s2803_s10] ss:$0 sm:$0xff] }
 0x278   : > { %v937_v3 = vpop.f32.mrf.mxu0 }
 0x279   : > { %v938_v9 = vadd.f32 %v1752_v35, %v937_v3 }
 0x27a   : > { %v1896_v37 = vpop.f32.mrf.mxu0 }
 0x27b   : > { %v974_v54 = vmax.f32 %v938_v9, 0.0 }
 0x27c   : > { %v942_v17 = vpop.f32.mrf.mxu0 }
 0x27d   : > { %v983_v22 = vpack.c.bf16 %v974_v54, %v973_v46  ;;  %v943_v45 = vadd.f32 %v1752_v35, %v942_v17 }
 0x27e   : > { %v1899_v26 = vpop.f32.mrf.mxu0 }
 0x27f   : > { %1918 = vmatmul.mubr.msk.bf16.vlgmr.msra.gmra.mxu1 %vm758_vm3, %v983_v22  ;;  %v975_v47 = vmax.f32 %v943_v45, 0.0 }
 0x280   : > { %v945_v60 = vpop.f32.mrf.mxu0  ;;  %1921 = vmatprep.mubr.msk.bf16.mxu1 %vm2294_vm0, %v2293_v1 }
 0x281   : > { %v946_v6 = vadd.f32 %v1752_v35, %v945_v60 }
 0x282   : > { %v1900_v13 = vpop.f32.mrf.mxu0 }
 0x283   : > { %v976_v48 = vmax.f32 %v946_v6, 0.0 }
 0x284   : > { %v950_v50 = vpop.f32.mrf.mxu0 }
 0x285   : > { %v984_v51 = vpack.c.bf16 %v976_v48, %v975_v47  ;;  %v951_v53 = vadd.f32 %v1752_v35, %v950_v50 }
 0x286   : > { %v1903_v52 = vpop.f32.mrf.mxu0 }
 0x287   : > { %1922 = vmatmul.mubr.msk.bf16.gmra.mxu1 %vm758_vm3, %v984_v51  ;;  %v977_v59 = vmax.f32 %v951_v53, 0.0 }
 0x288   : > { %v953_v55 = vpop.f32.mrf.mxu0  ;;  %1925 = vmatprep.mubr.msk.bf16.mxu1 %vm2294_vm0, %v2293_v1 }
 0x289   : > { %v954_v56 = vadd.f32 %v1752_v35, %v953_v55 }
 0x28a   : > { %v1904_v57 = vpop.f32.mrf.mxu0 }
 0x28b   : > { %v978_v61 = vmax.f32 %v954_v56, 0.0 }
 0x28c   : > { %v958_v62 = vpop.f32.mrf.mxu0 }
 0x28d   : > { %v985_v63 = vpack.c.bf16 %v978_v61, %v977_v59  ;;  %v959_v2 = vadd.f32 %v1752_v35, %v958_v62 }
 0x28e   : > { %v1907_v0 = vpop.f32.mrf.mxu0 }
 0x28f   : > { %1926 = vmatmul.mubr.msk.bf16.gmra.mxu1 %vm758_vm3, %v985_v63  ;;  %v979_v8 = vmax.f32 %v959_v2, 0.0 }
 0x290   : > { %v961_v4 = vpop.f32.mrf.mxu0  ;;  %1929 = vmatprep.mubr.msk.bf16.mxu1 %vm2294_vm0, %v2293_v1 }
 0x291   : > { %v962_v5 = vadd.f32 %v1752_v35, %v961_v4 }
 0x292   : > { %v1908_v7 = vpop.f32.mrf.mxu0 }
 0x293   : > { %v980_v10 = vmax.f32 %v962_v5, 0.0 }
 0x294   : > { %v966_v11 = vpop.f32.mrf.mxu0 }
 0x295   : > { %v986_v12 = vpack.c.bf16 %v980_v10, %v979_v8  ;;  %v967_v15 = vadd.f32 %v1752_v35, %v966_v11 }
 0x296   : > { %v1911_v14 = vpop.f32.mrf.mxu0 }
 0x297   : > { %1930 = vmatmul.mubr.msk.bf16.gmra.mxu1 %vm758_vm3, %v986_v12  ;;  %v981_v20 = vmax.f32 %v967_v15, 0.0 }
 0x298   : > { %v969_v16 = vpop.f32.mrf.mxu0  ;;  %1933 = vmatprep.mubr.msk.bf16.mxu1 %vm2294_vm0, %v2293_v1 }
 0x299   : > { %v970_v18 = vadd.f32 %v1752_v35, %v969_v16 }
 0x29a   : > { %v1912_v19 = vpop.f32.mrf.mxu0 }
 0x29b   : > { %v982_v21 = vmax.f32 %v970_v18, 0.0 }
 0x29c   : > { %v1157_v23 = vpop.f32.mrf.mxu0 }
 0x29d   : > { %v987_v24 = vpack.c.bf16 %v982_v21, %v981_v20 }
 0x29e   : > { %v1943_v25 = vpop.f32.mrf.mxu0 }
 0x29f   : > { %1934 = vmatmul.mubr.msk.bf16.gmra.mxu1 %vm758_vm3, %v987_v24 }
 0x2a0   : > { %v1160_v27 = vpop.f32.mrf.mxu0 }
 0x2a2   : > { %v1944_v28 = vpop.f32.mrf.mxu0 }
 0x2a4   : > { %v1165_v29 = vpop.f32.mrf.mxu0 }
 0x2a6   : > { %v1947_v30 = vpop.f32.mrf.mxu0 }
 0x2a8   : > { %v1168_v31 = vpop.f32.mrf.mxu0 }
 0x2aa   : > { %v1948_v32 = vpop.f32.mrf.mxu0 }
 0x2ac   : > { %v1173_v33 = vpop.f32.mrf.mxu0 }
 0x2ae   : > { %v1951_v34 = vpop.f32.mrf.mxu0 }
 0x2b0   : > { %v1176_v36 = vpop.f32.mrf.mxu0 }
 0x2b2   : > { %v1952_v1 = vpop.f32.mrf.mxu0 }
 0x2b4   : > { %v1181_v38 = vpop.f32.mrf.mxu0 }
 0x2b6   : > { %v1955_v39 = vpop.f32.mrf.mxu0 }
 0x2b8   : > { %v1184_v40 = vpop.f32.mrf.mxu0 }
 0x2ba   : > { %v1956_v41 = vpop.f32.mrf.mxu0 }
 0x2bc   : > { %v1189_v42 = vpop.f32.mrf.mxu0 }
 0x2be   : > { %v1959_v44 = vpop.f32.mrf.mxu0 }
 0x2c0   : > { %v1192_v35 = vpop.f32.mrf.mxu0 }
 0x2c2   : > { %v1960_v43 = vpop.f32.mrf.mxu0 }
 0x33f   : > { %v1057_v49 = vpop.f32.mrf.mxu1 }
 0x340   : > { %v1158_v3 = vadd.f32 %v1157_v23, %v1057_v49 }
 0x341   : > { %v1919_v9 = vpop.f32.mrf.mxu1 }
 0x342   : > { %v1203_v37 = vadd.f32 %v1774_v58, %v1158_v3 }
 0x343   : > { %v1060_v46 = vpop.f32.mrf.mxu1 }
 0x344   : > { %1214 = vst.msk [vmem:[%s2663_s23] sm:$0xff] %vm1213_vm4, %v1203_v37  ;;  %v1161_v54 = vadd.f32 %v1160_v27, %v1060_v46 }
 0x345   : > { %v1920_v17 = vpop.f32.mrf.mxu1 }
 0x346   : > { %v1204_v22 = vadd.f32 %v1774_v58, %v1161_v54 }
 0x347   : > { %v1065_v26 = vpop.f32.mrf.mxu1 }
 0x348   : > { %1215 = vst.msk [vmem:[%s2663_s23 + $0x8] sm:$0xff] %vm1213_vm4, %v1204_v22  ;;  %v1166_v45 = vadd.f32 %v1165_v29, %v1065_v26 }
 0x349   : > { %v1923_v60 = vpop.f32.mrf.mxu1 }
 0x34a   : > { %v1205_v6 = vadd.f32 %v1774_v58, %v1166_v45 }
 0x34b   : > { %v1068_v13 = vpop.f32.mrf.mxu1 }
 0x34c   : > { %1216 = vst.msk [vmem:[%s2663_s23 + $0x10] sm:$0xff] %vm1213_vm4, %v1205_v6  ;;  %v1169_v47 = vadd.f32 %v1168_v31, %v1068_v13 }
 0x34d   : > { %v1924_v48 = vpop.f32.mrf.mxu1 }
 0x34e   : > { %v1206_v50 = vadd.f32 %v1774_v58, %v1169_v47 }
 0x34f   : > { %v1073_v51 = vpop.f32.mrf.mxu1 }
 0x350   : > { %1217 = vst.msk [vmem:[%s2663_s23 + $0x18] sm:$0xff] %vm1213_vm4, %v1206_v50  ;;  %v1174_v52 = vadd.f32 %v1173_v33, %v1073_v51 }
 0x351   : > { %v1927_v53 = vpop.f32.mrf.mxu1 }
 0x352   : > { %v1207_v55 = vadd.f32 %v1774_v58, %v1174_v52 }
 0x353   : > { %v1076_v56 = vpop.f32.mrf.mxu1 }
 0x354   : > { %1218 = vst.msk [vmem:[%s2663_s23 + $0x20] sm:$0xff] %vm1213_vm4, %v1207_v55  ;;  %v1177_v57 = vadd.f32 %v1176_v36, %v1076_v56 }
 0x355   : > { %v1928_v59 = vpop.f32.mrf.mxu1 }
 0x356   : > { %v1208_v61 = vadd.f32 %v1774_v58, %v1177_v57 }
 0x357   : > { %v1081_v62 = vpop.f32.mrf.mxu1 }
 0x358   : > { %1219 = vst.msk [vmem:[%s2663_s23 + $0x28] sm:$0xff] %vm1213_vm4, %v1208_v61  ;;  %v1182_v63 = vadd.f32 %v1181_v38, %v1081_v62 }
 0x359   : > { %v1931_v0 = vpop.f32.mrf.mxu1 }
 0x35a   : > { %v1209_v2 = vadd.f32 %v1774_v58, %v1182_v63 }
 0x35b   : > { %v1084_v4 = vpop.f32.mrf.mxu1 }
 0x35c   : > { %1220 = vst.msk [vmem:[%s2663_s23 + $0x30] sm:$0xff] %vm1213_vm4, %v1209_v2  ;;  %v1185_v5 = vadd.f32 %v1184_v40, %v1084_v4 }
 0x35d   : > { %v1932_v7 = vpop.f32.mrf.mxu1 }
 0x35e   : > { %v1210_v8 = vadd.f32 %v1774_v58, %v1185_v5 }
 0x35f   : > { %v1089_v10 = vpop.f32.mrf.mxu1 }
 0x360   : > { %1221 = vst.msk [vmem:[%s2663_s23 + $0x38] sm:$0xff] %vm1213_vm4, %v1210_v8  ;;  %v1190_v11 = vadd.f32 %v1189_v42, %v1089_v10 }
 0x361   : > { %v1935_v12 = vpop.f32.mrf.mxu1 }
 0x362   : > { %v1211_v14 = vadd.f32 %v1774_v58, %v1190_v11 }
 0x363   : > { %v1092_v15 = vpop.f32.mrf.mxu1 }
 0x364   : > { %1222 = vst.msk [vmem:[%s2663_s23 + $0x40] sm:$0xff] %vm1213_vm4, %v1211_v14  ;;  %v1193_v16 = vadd.f32 %v1192_v35, %v1092_v15  ;;  %1234 = sbr.rel (!%p2386_p4) target bundleno = 926 (0x39e), region = 68 }
 0x365   : > { %v1936_v18 = vpop.f32.mrf.mxu1 }
 0x366   : > { %v1212_v19 = vadd.f32 %v1774_v58, %v1193_v16 }
 0x368   : > { %1223 = vst.msk [vmem:[%s2663_s23 + $0x48] sm:$0xff] %vm1213_vm4, %v1212_v19 }
 0x369   : > { %s2829_s21 = smov (!%p1237_p8, %s1236_s21), 10 }
 0x36a   : > { %s1775_s15 = sshll.u32 %s2829_s21, 7 }
 0x36b   : > { %p1778_p9 = scmp.eq.s32.totalorder %s1775_s15, 0 }
 0x36c   : > { %2133 = sdivrem.u32 (!%p1778_p9), %s2829_s21, 10 }
 0x36d   : > { %1245 = sbr.rel (%p1778_p9) target bundleno = 926 (0x39e), region = 72 }
 0x375   : > { %s2698_s16 = spop.drf %2133 }
 0x376   : > { %p1779_p10 = scmp.le.s32.totalorder %s2698_s16, 0 }
 0x377   : > { %s2819_s17 = smov (!%p1779_p10), %s2692_s13  ;;  %s2820_s18 = smov (!%p1779_p10), %s2663_s23 }
 0x378   : > { %1634 = sbr.rel (%p1779_p10) target bundleno = 901 (0x385), region = 219  ;;  %s2707_s19 = smov (!%p1779_p10), 0  }
 0x379   : > { %s2709_s20 = smov (!%p1779_p10), 0  }
 0x37d LB: >> { %v1328_v20 = vld [vmem:[%s2235_s18] sm:$0xff]  ;;  %v1330_v21 = vld [vmem:[%s2235_s18 + $0x8] sm:$0xff]  ;;  %v1332_v23 = vld [vmem:[%s2235_s18 + $0x10] sm:$0xff]  ;;  %s1348_s26 = sadd.s32 1, %s2239_s19  ;;  %s1322_s20 = sadd.s32 1, %s2243_s20   ;;  %s2243_s20 = sphi %s2709_s20, %s1322_s20   ;;  %s2239_s19 = sphi %s2707_s19, %s2821_s19   ;;  %s2235_s18 = sphi %s2820_s18, %s1353_s18   ;;  %s2231_s17 = sphi %s2819_s17, %s1354_s17  }
 0x37e   : >> { %1329 = vst [vmem:[%s2231_s17] sm:$0xff] %v1328_v20  ;;  %1331 = vst [vmem:[%s2231_s17 + $0x8] sm:$0xff] %v1330_v21  ;;  %v1334_v24 = vld [vmem:[%s2235_s18 + $0x18] sm:$0xff]  ;;  %v1336_v25 = vld [vmem:[%s2235_s18 + $0x20] sm:$0xff]  ;;  %p1349_p11 = scmp.ge.s32.totalorder %s1348_s26, %s2698_s16  ;;  %p1321_p12 = scmp.ge.s32.totalorder %s1322_s20, %s2698_s16 }
 0x37f   : >> { %1333 = vst [vmem:[%s2231_s17 + $0x10] sm:$0xff] %v1332_v23  ;;  %v1338_v27 = vld [vmem:[%s2235_s18 + $0x28] sm:$0xff]  ;;  %1335 = vst [vmem:[%s2231_s17 + $0x18] sm:$0xff] %v1334_v24  ;;  %v1340_v28 = vld [vmem:[%s2235_s18 + $0x30] sm:$0xff] }
 0x380   : >> { %1337 = vst [vmem:[%s2231_s17 + $0x20] sm:$0xff] %v1336_v25  ;;  %1339 = vst [vmem:[%s2231_s17 + $0x28] sm:$0xff] %v1338_v27  ;;  %v1342_v29 = vld [vmem:[%s2235_s18 + $0x38] sm:$0xff]  ;;  %v1344_v30 = vld [vmem:[%s2235_s18 + $0x40] sm:$0xff]  ;;  %s2831_s26 = smov (%p1349_p11, %s1348_s26), 0  ;;  %1324 = sbr.rel (!%p1321_p12) target bundleno = 893 (0x37d), region = 225 }
 0x381   : >> { %1341 = vst [vmem:[%s2231_s17 + $0x30] sm:$0xff] %v1340_v28  ;;  %1343 = vst [vmem:[%s2231_s17 + $0x38] sm:$0xff] %v1342_v29  ;;  %v1346_v31 = vld [vmem:[%s2235_s18 + $0x48] sm:$0xff]  ;;  %s1351_s27 = smul.u32 80, %s2831_s26  ;;  %s2821_s19 = smov %s2831_s26 }
 0x382   : >> { %1345 = vst [vmem:[%s2231_s17 + $0x40] sm:$0xff] %v1344_v30  ;;  %1347 = vst [vmem:[%s2231_s17 + $0x48] sm:$0xff] %v1346_v31 }
 0x383   : >> { %s1353_s18 = scalar_lea.vmem %s2663_s23, %s1351_s27 [#allocation2]   ;;  %s1354_s17 = scalar_lea.vmem %s2692_s13, %s1351_s27  }
 0x385 PF: > { %2135 = sdivrem.u32 %s2829_s21, 10 }
 0x386   : > { %s1780_s15 = smul.u32 80, %s2698_s16 }
 0x388   : > { %s1359_s27 = scalar_lea.vmem %s2663_s23, %s1780_s15 [#allocation2]   ;;  %s1361_s0 = scalar_lea.vmem %s2692_s13, %s1780_s15  }
 0x38e   : > { %s2136_s1 = spop.drf %2135 }
 0x38f   : > { %p1782_p13 = scmp.le.s32.totalorder %s2136_s1, 0 }
 0x390   : > { %s2245_s2 = smov (!%p1782_p13), %s1361_s0   ;;  %s2249_s3 = smov (!%p1782_p13), %s1359_s27  }
 0x391   : > { %1648 = sbr.rel (%p1782_p13) target bundleno = 926 (0x39e), region = 230  ;;  %s2253_s4 = smov (!%p1782_p13), 0  }
 0x392   : > { %s2257_s5 = smov (!%p1782_p13), 0  }
 0x396 LB: >> { %v1371_v32 = vld [vmem:[%s2251_s3] sm:$0xff]  ;;  %s1373_s17 = sadd.s32 1, %s2255_s4  ;;  %s1365_s5 = sadd.s32 1, %s2259_s5   ;;  %s2259_s5 = sphi %s2257_s5, %s1365_s5   ;;  %s2255_s4 = sphi %s2253_s4, %s2254_s4   ;;  %s2251_s3 = sphi %s2249_s3, %s1378_s3   ;;  %s2247_s2 = sphi %s2245_s2, %s1379_s2  }
 0x397   : >> { %1372 = vst [vmem:[%s2247_s2] sm:$0xff] %v1371_v32  ;;  %p1374_p0 = scmp.ge.s32.totalorder %s1373_s17, %s2136_s1  ;;  %p1364_p1 = scmp.ge.s32.totalorder %s1365_s5, %s2136_s1 }
 0x399   : >> { %s2833_s17 = smov (%p1374_p0, %s1373_s17), 0  ;;  %1367 = sbr.rel (!%p1364_p1) target bundleno = 918 (0x396), region = 236 }
 0x39a   : >> { %s1783_s23 = sshll.u32 %s2833_s17, 3  ;;  %s2254_s4 = smov %s2833_s17  }
 0x39b   : >> { %s1378_s3 = scalar_lea.vmem %s1359_s27, %s1783_s23 [#allocation2]   ;;  %s1379_s2 = scalar_lea.vmem %s1361_s0, %s1783_s23  }
 0x39e PF: > { %1385 = sbr.rel (!%p2386_p4) target bundleno = 991 (0x3df), region = 120  ;;  %s1387_s4 = ssub.s32 (%p2386_p4), 38, %s2396_s14 }
 0x39f   : > { %s1808_s21 = smul.u32 (%p2386_p4), 40, %s2374_s24  ;;  %p1388_p2 = scmp.lt.s32.totalorder (%p2386_p4), %s1387_s4, 10 }
 0x3a1   : > { %s2741_s18 = scalar_lea.vmem (%p2386_p4), %s2805_s12, %s1808_s21  }
 0x3a3   : > { %s2835_s4 = smov (!%p1388_p2, %s1387_s4), 10 }
 0x3a4   : > { %s1785_s2 = sshll.u32 %s2835_s4, 6 }
 0x3a5   : > { %p1788_p3 = scmp.eq.s32.totalorder %s1785_s2, 0 }
 0x3a6   : > { %2137 = sdivrem.u32 (!%p1788_p3), %s2835_s4, 10 }
 0x3a7   : > { %1396 = sbr.rel (%p1788_p3) target bundleno = 991 (0x3df), region = 124 }
 0x3af   : > { %s2747_s0 = spop.drf %2137 }
 0x3b0   : > { %p1789_p4 = scmp.le.s32.totalorder %s2747_s0, 0 }
 0x3b1   : > { %s2822_s1 = smov (!%p1789_p4), %s2741_s18  ;;  %s2823_s3 = smov (!%p1789_p4), %s2485_s30 }
 0x3b2   : > { %1662 = sbr.rel (%p1789_p4) target bundleno = 966 (0x3c6), region = 241  ;;  %s2756_s5 = smov (!%p1789_p4), 0  }
 0x3b3   : > { %s2758_s24 = smov (!%p1789_p4), 0  }
 0x3b7 LB: >> { %v1414_v33 = vld [vmem:[%s2267_s3] sm:$0xf]  ;;  %v1416_v34 = vld [vmem:[%s2267_s3 + $0x4] sm:$0xf]  ;;  %v1418_v36 = vld [vmem:[%s2267_s3 + $0x8] sm:$0xf]  ;;  %s2275_s24 = sphi %s2758_s24, %s1408_s24   ;;  %s2271_s5 = sphi %s2756_s5, %s2824_s5   ;;  %s2267_s3 = sphi %s2823_s3, %s1439_s3   ;;  %s2263_s1 = sphi %s2822_s1, %s1440_s1  }
 0x3b8   : >> { %1415 = vst [vmem:[%s2263_s1] sm:$0xf] %v1414_v33  ;;  %1417 = vst [vmem:[%s2263_s1 + $0x4] sm:$0xf] %v1416_v34  ;;  %v1420_v1 = vld [vmem:[%s2267_s3 + $0xc] sm:$0xf]  ;;  %s1434_s29 = sadd.s32 1, %s2271_s5 }
 0x3b9   : >> { %1419 = vst [vmem:[%s2263_s1 + $0x8] sm:$0xf] %v1418_v36  ;;  %v1422_v38 = vld [vmem:[%s2267_s3 + $0x10] sm:$0xf]  ;;  %v1424_v39 = vld [vmem:[%s2267_s3 + $0x14] sm:$0xf]  ;;  %p1435_p5 = scmp.ge.s32.totalorder %s1434_s29, %s2747_s0 }
 0x3ba   : >> { %1421 = vst [vmem:[%s2263_s1 + $0xc] sm:$0xf] %v1420_v1  ;;  %1423 = vst [vmem:[%s2263_s1 + $0x10] sm:$0xf] %v1422_v38  ;;  %v1426_v40 = vld [vmem:[%s2267_s3 + $0x18] sm:$0xf] }
 0x3bb   : >> { %1425 = vst [vmem:[%s2263_s1 + $0x14] sm:$0xf] %v1424_v39  ;;  %v1428_v41 = vld [vmem:[%s2267_s3 + $0x1c] sm:$0xf]  ;;  %v1430_v42 = vld [vmem:[%s2267_s3 + $0x20] sm:$0xf] }
 0x3bc   : >> { %1427 = vst [vmem:[%s2263_s1 + $0x18] sm:$0xf] %v1426_v40  ;;  %1429 = vst [vmem:[%s2263_s1 + $0x1c] sm:$0xf] %v1428_v41  ;;  %v1432_v44 = vld [vmem:[%s2267_s3 + $0x24] sm:$0xf] }
 0x3bd   : >> { %1431 = vst [vmem:[%s2263_s1 + $0x20] sm:$0xf] %v1430_v42  ;;  %1433 = vst [vmem:[%s2263_s1 + $0x24] sm:$0xf] %v1432_v44  ;;  %s2837_s29 = smov (%p1435_p5, %s1434_s29), 0  ;;  %s1408_s24 = sadd.s32 1, %s2275_s24  }
 0x3be   : >> { %s1437_s14 = smul.u32 40, %s2837_s29  ;;  %p1407_p6 = scmp.ge.s32.totalorder %s1408_s24, %s2747_s0 }
 0x3bf   : >> { %s2824_s5 = smov %s2837_s29 }
 0x3c0   : >> { %s1439_s3 = scalar_lea.vmem %s2485_s30, %s1437_s14 [#allocation3]   ;;  %s1440_s1 = scalar_lea.vmem %s2741_s18, %s1437_s14  }
 0x3c1   : > { %1410 = sbr.rel (!%p1407_p6) target bundleno = 951 (0x3b7), region = 247 }
 0x3c6 PF: > { %2139 = sdivrem.u32 %s2835_s4, 10 }
 0x3c7   : > { %s1790_s19 = smul.u32 40, %s2747_s0 }
 0x3c9   : > { %s1445_s20 = scalar_lea.vmem %s2485_s30, %s1790_s19 [#allocation3]   ;;  %s1447_s26 = scalar_lea.vmem %s2741_s18, %s1790_s19  }
 0x3cf   : > { %s2140_s15 = spop.drf %2139 }
 0x3d0   : > { %p1792_p7 = scmp.le.s32.totalorder %s2140_s15, 0 }
 0x3d1   : > { %s2277_s27 = smov (!%p1792_p7), %s1447_s26   ;;  %s2281_s17 = smov (!%p1792_p7), %s1445_s20  }
 0x3d2   : > { %1676 = sbr.rel (%p1792_p7) target bundleno = 991 (0x3df), region = 252  ;;  %s2285_s23 = smov (!%p1792_p7), 0  }
 0x3d3   : > { %s2289_s21 = smov (!%p1792_p7), 0  }
 0x3d7 LB: >> { %v1457_v35 = vld [vmem:[%s2283_s17] sm:$0xf]  ;;  %s1459_s13 = sadd.s32 1, %s2287_s23  ;;  %s1451_s21 = sadd.s32 1, %s2291_s21   ;;  %s2291_s21 = sphi %s2289_s21, %s1451_s21   ;;  %s2287_s23 = sphi %s2285_s23, %s2286_s23   ;;  %s2283_s17 = sphi %s2281_s17, %s1464_s17   ;;  %s2279_s27 = sphi %s2277_s27, %s1465_s27  }
 0x3d8   : >> { %1458 = vst [vmem:[%s2279_s27] sm:$0xf] %v1457_v35  ;;  %p1460_p8 = scmp.ge.s32.totalorder %s1459_s13, %s2140_s15  ;;  %p1450_p9 = scmp.ge.s32.totalorder %s1451_s21, %s2140_s15 }
 0x3da   : >> { %s2839_s13 = smov (%p1460_p8, %s1459_s13), 0  ;;  %1453 = sbr.rel (!%p1450_p9) target bundleno = 983 (0x3d7), region = 258 }
 0x3db   : >> { %s1793_s30 = sshll.u32 %s2839_s13, 2  ;;  %s2286_s23 = smov %s2839_s13  }
 0x3dc   : >> { %s1464_s17 = scalar_lea.vmem %s1445_s20, %s1793_s30 [#allocation3]   ;;  %s1465_s27 = scalar_lea.vmem %s1447_s26, %s1793_s30  }
 0x3df PF: > { %p20_p10 = scmp.ge.s32.totalorder %s2376_s25, 6   ;;  %s2825_s21 = smov %s2223_s22 }
 0x3e0   : > { %s2826_s22 = smov %s2384_s28  ;;  %s2827_s23 = smov %s2376_s25 }
 0x3e1   :  { %22 = sbr.rel (!%p20_p10) target bundleno = 9 (0x9), region = 269 }

</bundles_post_ra>
